<compile_context>
chip_gen: v7x
topology: tpu7x:2x2x1
jax: 0.10.0
libtpu: 0.0.40
codegen_flags: <defaults>
</compile_context>

<pallas_src>
import jax
import jax.numpy as jnp
from jax.experimental import pallas as pl
from jax.experimental.pallas import tpu as pltpu

_SQRT_2_OVER_PI = 0.7978845608028654


def _gelu_tanh(x):
    # tanh-approximate GELU (PyTorch nn.GELU(approximate='tanh')); tanh runs
    # on the EUP slot so it overlaps with the surrounding VPU/MXU work.
    # TODO(synk): PyTorch nn.GELU() default is the exact erf form; the tanh
    # approximation is used for portable Mosaic lowering (~1e-3 tail deltas).
    return 0.5 * x * (1.0 + jnp.tanh(_SQRT_2_OVER_PI * (x + 0.044715 * (x * x * x))))


def _ffn_kernel(x_ref, w1_ref, b1_ref, w2_ref, b2_ref, out_ref):
    # x_ref: (TILE_M, dim) f32    w1: (dim, hidden) bf16    b1: (1, hidden) f32
    # w2: (hidden, dim) bf16      b2: (1, dim) f32          out: (TILE_M, dim) f32
    x = x_ref[...]
    # bf16 MXU operands (native rate on v5e/v6e/v7x), f32 accumulation.
    h = jnp.dot(x.astype(jnp.bfloat16), w1_ref[...],
                preferred_element_type=jnp.float32) + b1_ref[...]
    h = _gelu_tanh(h)  # f32 VPU/EUP work -- free filler under the DMA bound.
    y = jnp.dot(h.astype(jnp.bfloat16), w2_ref[...],
                preferred_element_type=jnp.float32) + b2_ref[...]
    # Dropout(p=0.0) / eval-mode dropout is the identity -> nothing to do.
    out_ref[...] = y.astype(out_ref.dtype)


def _choose_tile_m(m, max_tile=512):
    """Pick the row tile: as large as possible (<= max_tile), a multiple of 8
    sublanes, dividing m exactly (no wrapper pad/slice HBM passes), and
    leaving >= 2 grid steps so both v7x TensorCores get work."""
    upper = min(max_tile, m)
    start = upper - (upper % 8)
    for t in range(start, 7, -8):
        if m % t == 0 and m // t >= 2:
            return t, 0
    # Ragged or tiny token counts: fall back to padding.
    # TODO(synk): mask the ragged tail in-kernel (pl.when + masked store)
    # instead of padding, to avoid the extra XLA pad/slice passes.
    t = max(8, min(max_tile, ((m + 7) // 8) * 8))
    pad = (-m) % t
    return t, pad


def feed_forward(x, params, *, max_tile_m=512):
    """x: (..., dim) float32.  Returns same shape/dtype."""
    orig_shape = x.shape
    dim = orig_shape[-1]
    w1, b1, w2, b2 = params["w1"], params["b1"], params["w2"], params["b2"]
    hidden = w1.shape[1]
    assert w1.shape == (dim, hidden) and w2.shape == (hidden, dim)

    # Flatten all leading dims into a token axis.
    x_flat = x.reshape(-1, dim)
    m = x_flat.shape[0]
    tile_m, pad = _choose_tile_m(m, max_tile_m)
    if pad:
        x_flat = jnp.pad(x_flat, ((0, pad), (0, 0)))
    m_padded = m + pad
    grid = (m_padded // tile_m,)

    # VMEM budget: double-buffered x/out tiles + resident bf16 weights + slack.
    tile_io_bytes = 2 * (2 * tile_m * dim * 4)                       # x + out, f32, 2 bufs
    weight_bytes = 2 * (2 * dim * hidden * 2 + (hidden + dim) * 4)   # W1/W2 bf16, b1/b2 f32
    h_bytes = 4 * tile_m * hidden * 4                                # intermediates slack
    vmem_needed = tile_io_bytes + weight_bytes + h_bytes
    # Cap at 32 MiB: within v7x's 64 MiB physical VMEM, plenty for these shapes.
    vmem_limit = int(min(32 * 1024 * 1024, max(16 * 1024 * 1024, 2 * vmem_needed)))

    cost = pl.CostEstimate(
        flops=4 * m_padded * dim * hidden,               # 2 matmuls, 2*M*K*N each
        transcendentals=m_padded * hidden,               # one tanh per hidden act
        bytes_accessed=(4 * 2 * m_padded * dim           # x in + y out (f32)
                        + 2 * 2 * dim * hidden           # W1/W2 (bf16)
                        + 4 * (hidden + dim)),           # b1/b2 (f32)
    )

    # The four weight/bias specs have a constant index_map -> DMA'd once,
    # VMEM-resident across all grid steps.
    # TODO(synk): single-buffer them via pipeline_mode=pl.Buffered(1) once
    # validated on the deployed jax version (negligible at these weight sizes).
    out = pl.pallas_call(
        _ffn_kernel,
        out_shape=jax.ShapeDtypeStruct((m_padded, dim), x.dtype),
        grid=grid,
        in_specs=[
            pl.BlockSpec((tile_m, dim), lambda i: (i, 0)),   # x: streamed by row tile
            pl.BlockSpec((dim, hidden), lambda i: (0, 0)),   # W1: resident (bf16)
            pl.BlockSpec((1, hidden), lambda i: (0, 0)),     # b1: resident
            pl.BlockSpec((hidden, dim), lambda i: (0, 0)),   # W2: resident (bf16)
            pl.BlockSpec((1, dim), lambda i: (0, 0)),        # b2: resident
        ],
        out_specs=pl.BlockSpec((tile_m, dim), lambda i: (i, 0)),
        compiler_params=pltpu.CompilerParams(
            dimension_semantics=("parallel",),               # row tiles independent
            vmem_limit_bytes=vmem_limit,
        ),
        cost_estimate=cost,
    )(x_flat, w1, b1, w2, b2)

    if pad:
        out = out[:m]
    return out.reshape(orig_shape)


def init_params(key, dim, hidden_dim):
    """Deterministic synthetic parameters (no checkpoint loading).
    Weights stored bf16 (MXU operands); biases f32."""
    k1, k2, k3, k4 = jax.random.split(key, 4)
    scale = 0.02
    return {
        "w1": (scale * jax.random.normal(k1, (dim, hidden_dim), jnp.float32)).astype(jnp.bfloat16),
        "b1": scale * jax.random.normal(k2, (1, hidden_dim), jnp.float32),
        "w2": (scale * jax.random.normal(k3, (hidden_dim, dim), jnp.float32)).astype(jnp.bfloat16),
        "b2": scale * jax.random.normal(k4, (1, dim), jnp.float32),
    }


def _reference(x, params):
    """Pure-JAX f32 reference of the same forward pass."""
    w1 = params["w1"].astype(jnp.float32)
    w2 = params["w2"].astype(jnp.float32)
    h = _gelu_tanh(x @ w1 + params["b1"])
    return h @ w2 + params["b2"]


if __name__ == "__main__":
    key = jax.random.PRNGKey(0)
    k_param, k_x = jax.random.split(key)

    B, S, DIM, HIDDEN = 2, 128, 128, 256      # small transformer-FFN shapes
    params = init_params(k_param, DIM, HIDDEN)
    x = jax.random.normal(k_x, (B, S, DIM), jnp.float32)

    out = feed_forward(x, params)             # m=256 -> tile_m=128, 2 grid steps, no pad
    jax.block_until_ready(out)

    ref = _reference(x, params)
    assert out.shape == (B, S, DIM), out.shape
    max_err = float(jnp.max(jnp.abs(out - ref)))
    # Tolerance loosened for bf16 MXU operands (f32 accumulation keeps it small).
    assert jnp.allclose(out, ref, atol=1e-2, rtol=1e-2), f"mismatch vs reference: {max_err}"

    print("KERNEL_OK")
</pallas_src>

<mosaic_0001>
module attributes {stable_mosaic.version = 11 : i64} {
  func.func @_ffn_kernel(%arg0: i32, %arg1: memref<128x128xf32, #tpu.memory_space<vmem>>, %arg2: memref<128x256xbf16, #tpu.memory_space<vmem>>, %arg3: memref<1x256xf32, #tpu.memory_space<vmem>>, %arg4: memref<256x128xbf16, #tpu.memory_space<vmem>>, %arg5: memref<1x128xf32, #tpu.memory_space<vmem>>, %arg6: memref<128x128xf32, #tpu.memory_space<vmem>>) attributes {dimension_semantics = [#tpu.dimension_semantics<parallel>], iteration_bounds = array<i64: 2>, scalar_prefetch = 0 : i64, scratch_operands = 0 : i64, tpu.core_type = #tpu.core_type<tc>, window_params = [{transform_indices = @transform_0, window_bounds = array<i64: 128, 128>}, {pipeline_mode = #tpu.pipeline_mode<synchronous>, transform_indices = @transform_1, window_bounds = array<i64: 128, 256>}, {pipeline_mode = #tpu.pipeline_mode<synchronous>, transform_indices = @transform_2, window_bounds = array<i64: 1, 256>}, {pipeline_mode = #tpu.pipeline_mode<synchronous>, transform_indices = @transform_3, window_bounds = array<i64: 256, 128>}, {pipeline_mode = #tpu.pipeline_mode<synchronous>, transform_indices = @transform_4, window_bounds = array<i64: 1, 128>}, {transform_indices = @transform_5, window_bounds = array<i64: 128, 128>}]} {
    %c0 = arith.constant 0 : index
    %c0_0 = arith.constant 0 : index
    %0 = vector.load %arg1[%c0, %c0_0] : memref<128x128xf32, #tpu.memory_space<vmem>>, vector<128x128xf32>
    %1 = arith.truncf %0 : vector<128x128xf32> to vector<128x128xbf16>
    %c0_1 = arith.constant 0 : index
    %c0_2 = arith.constant 0 : index
    %2 = vector.load %arg2[%c0_1, %c0_2] : memref<128x256xbf16, #tpu.memory_space<vmem>>, vector<128x256xbf16>
    %cst = arith.constant dense<0.000000e+00> : vector<128x256xf32>
    %3 = tpu.matmul %1, %2, %cst {dimension_numbers = #tpu.dot_dimension_numbers<[1], [0], [0], [1], [0, 0, 1, 1], [], []>} : vector<128x128xbf16>, vector<128x256xbf16>, vector<128x256xf32> -> vector<128x256xf32>
    %c0_3 = arith.constant 0 : index
    %c0_4 = arith.constant 0 : index
    %4 = vector.load %arg3[%c0_3, %c0_4] : memref<1x256xf32, #tpu.memory_space<vmem>>, vector<1x256xf32>
    %5 = vector.broadcast %4 : vector<1x256xf32> to vector<128x256xf32>
    %6 = arith.addf %3, %5 : vector<128x256xf32>
    %cst_5 = arith.constant 5.000000e-01 : f32
    %7 = vector.broadcast %cst_5 : f32 to vector<128x256xf32>
    %8 = arith.mulf %7, %6 : vector<128x256xf32>
    %9 = arith.mulf %6, %6 : vector<128x256xf32>
    %10 = arith.mulf %9, %6 : vector<128x256xf32>
    %cst_6 = arith.constant 4.471500e-02 : f32
    %11 = vector.broadcast %cst_6 : f32 to vector<128x256xf32>
    %12 = arith.mulf %11, %10 : vector<128x256xf32>
    %13 = arith.addf %6, %12 : vector<128x256xf32>
    %cst_7 = arith.constant 0.797884583 : f32
    %14 = vector.broadcast %cst_7 : f32 to vector<128x256xf32>
    %15 = arith.mulf %14, %13 : vector<128x256xf32>
    %16 = math.tanh %15 : vector<128x256xf32>
    %cst_8 = arith.constant 1.000000e+00 : f32
    %17 = vector.broadcast %cst_8 : f32 to vector<128x256xf32>
    %18 = arith.addf %17, %16 : vector<128x256xf32>
    %19 = arith.mulf %8, %18 : vector<128x256xf32>
    %20 = arith.truncf %19 : vector<128x256xf32> to vector<128x256xbf16>
    %c0_9 = arith.constant 0 : index
    %c0_10 = arith.constant 0 : index
    %21 = vector.load %arg4[%c0_9, %c0_10] : memref<256x128xbf16, #tpu.memory_space<vmem>>, vector<256x128xbf16>
    %cst_11 = arith.constant dense<0.000000e+00> : vector<128x128xf32>
    %22 = tpu.matmul %20, %21, %cst_11 {dimension_numbers = #tpu.dot_dimension_numbers<[1], [0], [0], [1], [0, 0, 1, 1], [], []>} : vector<128x256xbf16>, vector<256x128xbf16>, vector<128x128xf32> -> vector<128x128xf32>
    %c0_12 = arith.constant 0 : index
    %c0_13 = arith.constant 0 : index
    %23 = vector.load %arg5[%c0_12, %c0_13] : memref<1x128xf32, #tpu.memory_space<vmem>>, vector<1x128xf32>
    %24 = vector.broadcast %23 : vector<1x128xf32> to vector<128x128xf32>
    %25 = arith.addf %22, %24 : vector<128x128xf32>
    %c0_14 = arith.constant 0 : index
    %c0_15 = arith.constant 0 : index
    %26 = vector.load %arg6[%c0_14, %c0_15] : memref<128x128xf32, #tpu.memory_space<vmem>>, vector<128x128xf32>
    tpu.vector_store %arg6[%c0_14, %c0_15], %25 {strides = array<i32>} : memref<128x128xf32, #tpu.memory_space<vmem>>, vector<128x128xf32>,
    return
  }
  func.func @transform_0(%arg0: i32) -> (i32, i32) {
    %c0_i32 = arith.constant 0 : i32
    %c0_i32_0 = arith.constant 0 : i32
    return %arg0, %c0_i32 : i32, i32
  }
  func.func @transform_1(%arg0: i32) -> (i32, i32) {
    %c0_i32 = arith.constant 0 : i32
    %c0_i32_0 = arith.constant 0 : i32
    %c0_i32_1 = arith.constant 0 : i32
    return %c0_i32, %c0_i32_0 : i32, i32
  }
  func.func @transform_2(%arg0: i32) -> (i32, i32) {
    %c0_i32 = arith.constant 0 : i32
    %c0_i32_0 = arith.constant 0 : i32
    %c0_i32_1 = arith.constant 0 : i32
    return %c0_i32, %c0_i32_0 : i32, i32
  }
  func.func @transform_3(%arg0: i32) -> (i32, i32) {
    %c0_i32 = arith.constant 0 : i32
    %c0_i32_0 = arith.constant 0 : i32
    %c0_i32_1 = arith.constant 0 : i32
    return %c0_i32, %c0_i32_0 : i32, i32
  }
  func.func @transform_4(%arg0: i32) -> (i32, i32) {
    %c0_i32 = arith.constant 0 : i32
    %c0_i32_0 = arith.constant 0 : i32
    %c0_i32_1 = arith.constant 0 : i32
    return %c0_i32, %c0_i32_0 : i32, i32
  }
  func.func @transform_5(%arg0: i32) -> (i32, i32) {
    %c0_i32 = arith.constant 0 : i32
    %c0_i32_0 = arith.constant 0 : i32
    return %arg0, %c0_i32 : i32, i32
  }
}

</mosaic_0001>

<bundles_post_ra>
// kernel: tpu_custom_call.1
= control target key start
LH: loop header
LB: loop body
LE: loop exit
PB: predicated region body
PF: predicated region fallthrough
CT: control target
= control target key end

     0   :  { %10 = vsyncpa [#allocation3], 0  ;;  %s2251_s0 = inlined_call_operand.hbm [shape: f32[256,128], index: 0, kind: input, shape index: {}]   ;;  %s2252_s1 = inlined_call_operand.hbm [shape: bf16[128,256], index: 1, kind: input, shape index: {}]   ;;  %s2253_s2 = inlined_call_operand.vmem [shape: f32[1,256], index: 2, kind: input, shape index: {}]   ;;  %s2254_s3 = inlined_call_operand.hbm [shape: bf16[256,128], index: 3, kind: input, shape index: {}]   ;;  %s2255_s4 = inlined_call_operand.vmem [shape: f32[1,128], index: 4, kind: input, shape index: {}]   ;;  %s2256_s5 = inlined_call_operand.hbm [shape: f32[256,128], index: 5, kind: output, shape index: {}]  }
   0x1   :  { %12 = vsyncpa [#allocation3 + $0x1], 0 }
   0x2   :  { %13 = vsyncpa [#allocation6], 0 }
   0x3   :  { %14 = vsyncpa [#allocation4], 0 }
   0x4   :  { %16 = vsyncpa [#allocation4 + $0x1], 0  ;;  %s1672_s18 = smov 0   ;;  %s1674_s19 = smov 0  }
   0x5   :  { %s1676_s20 = smov 0   ;;  %s1678_s21 = smov 0  }
   0x6 LB: > { %s1693_s22 = sadd.s32 4294967295, %s1629_s21   ;;  %s1178_s23 = sadd.s32 4294967294, %s1629_s21   ;;  %s1629_s21 = sphi %s1678_s21, %s2276_s21   ;;  %s1625_s20 = sphi %s1676_s20, %s2275_s20   ;;  %s1621_s19 = sphi %s1674_s19, %s2274_s19   ;;  %s1617_s18 = sphi %s1672_s18, %s2273_s18  }
   0x7   : > { %p42_p0 = scmp.ne.s32.totalorder %s1621_s19, %s1617_s18  ;;  %p2257_p1 = scmp.eq.s32.totalorder %s1693_s22, 0 }
   0x8   : > { %p156_p3 = scmp.eq.s32.totalorder %s1178_s23, 1  ;;  %p1179_p5 = scmp.ge.s32.totalorder %s1629_s21, 1 }
   0x9   : > { %p1702_p4 = por %p2257_p1, %p42_p0  ;;  %p163_p7 = scmp.lt.s32.totalorder %s1629_s21, 3 }
   0xa   : > { %p1707_p6 = por %p156_p3, %p42_p0  ;;  %s1631_s27 = smov [#allocation5]  }
   0xb   : > { %s2260_s24 = scalar_select %p1702_p4, 1, 0 }
   0xc   : > { %s2261_s25 = scalar_select %p1707_p6, 1, 0 }
   0xd   : > { %p1712_p8 = pnand %p1179_p5, %p163_p7  ;;  %s175_s28 = sshll.u32 %s1631_s27, 4  ;;  %s1716_s28 = int_to_ptr.vmem [resolvable:$true] %s175_s28 }
   0xe   : > { %s1632_s30 = smov [#allocation7]   ;;  %s1473_s9 = scalar_lea.hbm %s2252_s1, 2048 }
   0xf   : > { %p1307_p9 = pneg %p1712_p8  ;;  %s191_s6 = sshll.u32 %s1632_s30, 4  ;;  %s1727_s6 = int_to_ptr.vmem [resolvable:$true] %s191_s6 }
  0x10   : > { %p1474_p12 = scmp.ne.s32.totalorder %s2252_s1, %s1473_s9  ;;  %p1480_p5 = scmp.lt.u32.totalorder %s1473_s9, %s2252_s1 }
  0x11   : > { %p1723_p11 = pnand %p1307_p9, %p2257_p1 }
  0x13   : > { %p1475_p13 = pneg %p1723_p11 }
  0x15   : > { %p1476_p0 = pnand %p1475_p13, %p1474_p12 }
  0x17   : > { %p1477_p3 = pneg %p1476_p0 }
  0x19   : > { %p1482_p7 = pnand %p1480_p5, %p1477_p3 }
  0x1b   : > { %1485 = shalt.err (!%p1482_p7)
}
  0x1c   : > { %s1486_s14 = scalar_lea.vmem %s1716_s28, 2048  ;;  %p1494_p2 = scmp.lt.s32.totalorder %s1716_s28, %s1716_s28 }
  0x1d   : > { %p1487_p9 = scmp.ne.s32.totalorder %s1716_s28, %s1486_s14  ;;  %p1495_p12 = scmp.lt.s32.totalorder %s1486_s14, %s1486_s14 }
  0x1f   : > { %p1489_p10 = pnand %p1487_p9, %p1475_p13  ;;  %p1496_p0 = por %p1495_p12, %p1494_p2 }
  0x21   : > { %p1490_p1 = pneg %p1489_p10 }
  0x23   : > { %p1497_p6 = pnand %p1496_p0, %p1490_p1 }
  0x25   : > { %1500 = shalt.err (!%p1497_p6)
}
  0x26   : > { %s1633_s15 = smov 128   ;;  %s1634_s16 = smov 8  }
  0x27   : > { %1310 = dma.hbm_to_vmem [thread:$0]  (!%p1723_p11), %s2252_s1, 2048, %s1716_s28, [#allocation6], %s1633_s15, %s1633_s15, %s1634_s16  }
  0x28   : > { %s1501_s7 = scalar_lea.hbm %s2254_s3, 2048 }
  0x29   : > { %p1502_p1 = scmp.ne.s32.totalorder %s2254_s3, %s1501_s7  ;;  %p1508_p10 = scmp.lt.u32.totalorder %s1501_s7, %s2254_s3 }
  0x2b   : > { %p1504_p2 = pnand %p1502_p1, %p1475_p13 }
  0x2d   : > { %p1505_p6 = pneg %p1504_p2 }
  0x2f   : > { %p1510_p3 = pnand %p1508_p10, %p1505_p6 }
  0x31   : > { %1513 = shalt.err (!%p1510_p3)
}
  0x32   : > { %s1514_s28 = scalar_lea.vmem %s1727_s6, 2048  ;;  %p1522_p12 = scmp.lt.s32.totalorder %s1727_s6, %s1727_s6 }
  0x33   : > { %p1515_p5 = scmp.ne.s32.totalorder %s1727_s6, %s1514_s28  ;;  %p1523_p0 = scmp.lt.s32.totalorder %s1514_s28, %s1514_s28 }
  0x35   : > { %p1517_p7 = pnand %p1515_p5, %p1475_p13  ;;  %p1524_p1 = por %p1523_p0, %p1522_p12 }
  0x37   : > { %p1518_p9 = pneg %p1517_p7 }
  0x39   : > { %p1525_p2 = pnand %p1524_p1, %p1518_p9 }
  0x3b   : > { %1528 = shalt.err (!%p1525_p2)
}
  0x3c   : > { %s1635_s12 = smov 64   ;;  %s1636_s13 = smov 4  }
  0x3d   : > { %1313 = dma.hbm_to_vmem [thread:$0]  (!%p1723_p11), %s2254_s3, 2048, %s1727_s6, [#allocation6], %s1635_s12, %s1635_s12, %s1636_s13  }
  0x3e   : > { %s1785_s23 = sadd.s32 1, %s1629_s21   ;;  %s29_s30 = sadd.s32 1, %s1625_s20 }
  0x3f   : > { %s26_s27 = ssub.s32 %s1629_s21, %s1785_s23  ;;  %p36_p6 = scmp.ne.s32.totalorder %s1625_s20, %s1621_s19 }
  0x40   : > { %p27_p13 = scmp.eq.s32.totalorder %s26_s27, 0  ;;  %p37_p10 = scmp.eq.s32.totalorder %s1629_s21, 0 }
  0x41   : > { %p2264_p5 = scmp.eq.s32.totalorder %s1693_s22, 1  ;;  %p1324_p9 = scmp.lt.s32.totalorder %s1629_s21, 2 }
  0x42   : > { %s1794_s7 = scalar_select %p27_p13, %s1625_s20, %s29_s30  }
  0x43   : > { %p38_p3 = por %p37_p10, %p36_p6  ;;  %p1798_p7 = por %p2264_p5, %p36_p6 }
  0x44   : > { %s208_s29 = sand.u32 1, %s1625_s20   ;;  %s1229_s6 = sshll.u32 %s1629_s21, 11 }
  0x45   : > { %s2265_s8 = scalar_select %p1798_p7, 1, 0 }
  0x46   : > { %s1183_s9 = sshll.u32 %s208_s29, 7  ;;  %s1808_s28 = scalar_lea.hbm %s2251_s0, %s1229_s6 }
  0x47   : > { %s212_s12 = scalar_lea.vmem [#allocation2], %s1183_s9  ;;  %p1812_p11 = pnand %p1324_p9, %p38_p3 }
  0x48   : > { %s219_s13 = sshll.u32 %s212_s12, 4  ;;  %s1816_s17 = scalar_lea.sflag [#allocation3], %s208_s29  ;;  %s1810_s13 = int_to_ptr.vmem [resolvable:$true] %s219_s13 }
  0x49   : > { %s1529_s27 = scalar_lea.hbm %s1808_s28, 2048  ;;  %p1531_p0 = pneg %p1812_p11 }
  0x4a   : > { %p1530_p12 = scmp.ne.s32.totalorder %s1808_s28, %s1529_s27  ;;  %s1534_s6 = scalar_lea.hbm %s2251_s0, 4096 }
  0x4b   : > { %p1535_p13 = scmp.lt.u32.totalorder %s1808_s28, %s2251_s0  ;;  %p1536_p6 = scmp.lt.u32.totalorder %s1534_s6, %s1529_s27 }
  0x4c   : > { %p1532_p1 = pnand %p1531_p0, %p1530_p12  ;;  %p1538_p3 = scmp.lt.u32.totalorder %s1529_s27, %s1808_s28 }
  0x4d   : > { %p1537_p10 = por %p1536_p6, %p1535_p13 }
  0x4e   : > { %p1533_p2 = pneg %p1532_p1 }
  0x4f   : > { %p1539_p5 = por %p1538_p3, %p1537_p10 }
  0x51   : > { %p1540_p9 = pnand %p1539_p5, %p1533_p2 }
  0x53   : > { %1543 = shalt.err (!%p1540_p9)
}
  0x54   : > { %s1544_s29 = scalar_lea.vmem %s1810_s13, 2048  ;;  %s1637_s12 = smov [#allocation2]  }
  0x55   : > { %p1545_p12 = scmp.ne.s32.totalorder %s1810_s13, %s1544_s29  ;;  %s1549_s30 = sshll.u32 %s1637_s12, 4  ;;  %s1550_s30 = int_to_ptr.vmem [resolvable:$false] %s1549_s30 }
  0x56   : > { %s1551_s9 = scalar_lea.vmem %s1550_s30, 4096  ;;  %p1552_p4 = scmp.lt.s32.totalorder %s1810_s13, %s1550_s30 }
  0x57   : > { %p1547_p1 = pnand %p1545_p12, %p1531_p0  ;;  %p1553_p13 = scmp.lt.s32.totalorder %s1551_s9, %s1544_s29 }
  0x59   : > { %p1548_p7 = pneg %p1547_p1  ;;  %p1554_p6 = por %p1553_p13, %p1552_p4 }
  0x5b   : > { %p1555_p10 = pnand %p1554_p6, %p1548_p7 }
  0x5d   : > { %1558 = shalt.err (!%p1555_p10)
}
  0x5e   : > { %1317 = dma.hbm_to_vmem [thread:$0]  (!%p1812_p11), %s1808_s28, 2048, %s1810_s13, %s1816_s17, %s1633_s15, %s1633_s15, %s1634_s16  }
  0x5f   : > { %231 = sbr.rel (%p1712_p8) target bundleno = 691 (0x2b3), region = 40  ;;  %s1850_s27 = sand.u32 (!%p1712_p8), 1, %s1621_s19  }
  0x60   : > { %s1187_s6 = sshll.u32 (!%p1712_p8), %s1850_s27, 7  ;;  %s234_s10 = scalar_lea.sflag (!%p1712_p8), [#allocation3], %s1850_s27 }
  0x61   : > { %s1856_s14 = scalar_lea.vmem (!%p1712_p8), [#allocation2], %s1187_s6  ;;  %p2267_p4 = scmp.ne.s32.totalorder (!%p1712_p8), %s2260_s24, 0 }
  0x66   : > { %1604 = dma.done.wait (%p2267_p4), %s234_s10, 2048  }
  0x67   : > { %1606 = vsyncadd (%p2267_p4), %s234_s10, 4294965248  ;;  %p2268_p7 = scmp.eq.s32.totalorder %s1693_s22, 0 }
  0x69   : > { %1608 = dma.done.wait (%p2268_p7), [#allocation6], 4096   ;;  %p2269_p8 = pmov %p2268_p7 }
  0x6a   : > { %v1638_v0 = vmov 0   ;;  %v1369_v1 = vld [vmem:[#allocation5 + $0x4] ss:$8 sps:$4 sm:$0xff]   ;;  %v1371_v2 = vld [vmem:[#allocation5] ss:$8 sps:$4 sm:$0xff]   ;;  %v277_v20 = vld [vmem:[%s1856_s14 + $0x10] sm:$0xff]  ;;  %v317_v57 = vlaneseq }
  0x6b   : > { %1610 = vsyncadd (%p2269_p8), [#allocation6], 4294963200  ;;  %439 = vmatprep.mubr.bf16.mxu0 %v1638_v0  ;;  %407 = vmatprep.subr.bf16.mxu0 %v1369_v1  ;;  %v1372_v3 = vld [vmem:[#allocation5 + $0x14] ss:$8 sps:$4 sm:$0xff]   ;;  %v1374_v4 = vld [vmem:[#allocation5 + $0x10] ss:$8 sps:$4 sm:$0xff]  }
  0x6c   : > { %408 = vmatpush1.bf16.msra.mxu0 %v1371_v2  ;;  %v1375_v5 = vld [vmem:[#allocation5 + $0x24] ss:$8 sps:$4 sm:$0xff]   ;;  %v1377_v6 = vld [vmem:[#allocation5 + $0x20] ss:$8 sps:$4 sm:$0xff]   ;;  %v1378_v7 = vld [vmem:[#allocation5 + $0x34] ss:$8 sps:$4 sm:$0xff]  }
  0x6d   : > { %409 = vmatprep.subr.bf16.mxu0 %v1372_v3  ;;  %v1380_v8 = vld [vmem:[#allocation5 + $0x30] ss:$8 sps:$4 sm:$0xff]   ;;  %v1381_v9 = vld [vmem:[#allocation5 + $0x44] ss:$8 sps:$4 sm:$0xff]   ;;  %v1383_v10 = vld [vmem:[#allocation5 + $0x40] ss:$8 sps:$4 sm:$0xff]  }
  0x6e   : > { %v1384_v11 = vld [vmem:[#allocation5 + $0x54] ss:$8 sps:$4 sm:$0xff]   ;;  %v1386_v12 = vld [vmem:[#allocation5 + $0x50] ss:$8 sps:$4 sm:$0xff]   ;;  %v1387_v13 = vld [vmem:[#allocation5 + $0x64] ss:$8 sps:$4 sm:$0xff]  }
  0x6f   : > { %v1389_v14 = vld [vmem:[#allocation5 + $0x60] ss:$8 sps:$4 sm:$0xff]   ;;  %v1390_v15 = vld [vmem:[#allocation5 + $0x74] ss:$8 sps:$4 sm:$0xff]   ;;  %v1392_v16 = vld [vmem:[#allocation5 + $0x70] ss:$8 sps:$4 sm:$0xff]  }
  0x70   : > { %410 = vmatpush1.bf16.msra.mxu0 %v1374_v4  ;;  %v275_v17 = vld [vmem:[%s1856_s14] sm:$0xff]  ;;  %v276_v18 = vld [vmem:[%s1856_s14 + $0x8] sm:$0xff]  ;;  %v278_v21 = vld [vmem:[%s1856_s14 + $0x18] sm:$0xff]  ;;  %v318_v58 = vshrl.u32 %v317_v57, 7  ;;  %s2167_s28 = scalar_lea.vmem [#allocation8], %s1187_s6  ;;  %s1230_s13 = sshll.u32 %s1693_s22, 11 }
  0x71   : > { %411 = vmatprep.subr.bf16.mxu0 %v1375_v5  ;;  %v291_v19 = vpack.c.bf16 %v276_v18, %v275_v17  ;;  %v292_v22 = vpack.c.bf16 %v278_v21, %v277_v20  ;;  %v279_v23 = vld [vmem:[%s1856_s14 + $0x20] sm:$0xff]  ;;  %v280_v24 = vld [vmem:[%s1856_s14 + $0x28] sm:$0xff]  ;;  %v281_v26 = vld [vmem:[%s1856_s14 + $0x30] sm:$0xff]  ;;  %s1086_s17 = sshll.u32 %s2167_s28, 4  ;;  %s2202_s12 = scalar_lea.hbm %s2256_s5, %s1230_s13  ;;  %s2204_s17 = int_to_ptr.vmem [resolvable:$true] %s1086_s17 }
  0x72   : > { %v293_v25 = vpack.c.bf16 %v280_v24, %v279_v23  ;;  %v282_v27 = vld [vmem:[%s1856_s14 + $0x38] sm:$0xff]  ;;  %v283_v29 = vld [vmem:[%s1856_s14 + $0x40] sm:$0xff]  ;;  %v284_v30 = vld [vmem:[%s1856_s14 + $0x48] sm:$0xff]  ;;  %v319_v59 = vsub.s32 0, %v318_v58  ;;  %v323_v61 = vsub.s32 1, %v318_v58  ;;  %s1073_s22 = scalar_lea.sflag [#allocation4], %s1850_s27 }
  0x73   : > { %v294_v28 = vpack.c.bf16 %v282_v27, %v281_v26  ;;  %v295_v31 = vpack.c.bf16 %v284_v30, %v283_v29  ;;  %v285_v32 = vld [vmem:[%s1856_s14 + $0x50] sm:$0xff]  ;;  %v286_v33 = vld [vmem:[%s1856_s14 + $0x58] sm:$0xff]  ;;  %v287_v35 = vld [vmem:[%s1856_s14 + $0x60] sm:$0xff]  ;;  %s1559_s30 = scalar_lea.vmem %s2204_s17, 2048  ;;  %p2270_p0 = scmp.ne.s32.totalorder %s2265_s8, 0 }
  0x74   : > { %412 = vmatpush1.bf16.msra.mxu0 %v1377_v6  ;;  %v296_v34 = vpack.c.bf16 %v286_v33, %v285_v32  ;;  %v288_v36 = vld [vmem:[%s1856_s14 + $0x68] sm:$0xff]  ;;  %v289_v38 = vld [vmem:[%s1856_s14 + $0x70] sm:$0xff]  ;;  %v290_v39 = vld [vmem:[%s1856_s14 + $0x78] sm:$0xff]  ;;  %p1560_p11 = scmp.ne.s32.totalorder %s2204_s17, %s1559_s30  ;;  %s1639_s9 = smov [#allocation8]  }
  0x75   : > { %413 = vmatprep.subr.bf16.mxu0 %v1378_v7  ;;  %v297_v37 = vpack.c.bf16 %v288_v36, %v287_v35  ;;  %v298_v40 = vpack.c.bf16 %v290_v39, %v289_v38  ;;  %v1393_v41 = vld [vmem:[#allocation7 + $0x40] sm:$0xff]   ;;  %v1395_v43 = vld [vmem:[#allocation7 + $0x48] sm:$0xff]   ;;  %v1397_v45 = vld [vmem:[#allocation7 + $0x50] sm:$0xff]   ;;  %s1563_s6 = sshll.u32 %s1639_s9, 4  ;;  %s1564_s6 = int_to_ptr.vmem [resolvable:$false] %s1563_s6 }
  0x76   : > { %v1394_v42 = vld [vmem:[#allocation7] sm:$0xff]   ;;  %1231 = vmatprep.subr.bf16.mxu1 %v1393_v41  ;;  %v1396_v44 = vld [vmem:[#allocation7 + $0x8] sm:$0xff]   ;;  %v1398_v46 = vld [vmem:[#allocation7 + $0x10] sm:$0xff]   ;;  %p1561_p2 = pnand %p1560_p11, %p2270_p0  ;;  %s1565_s10 = scalar_lea.vmem %s1564_s6, 4096 }
  0x77   : > { %1232 = vmatpush3.bf16.msra.mxu1 %v1394_v42  ;;  %v1399_v47 = vld [vmem:[#allocation7 + $0x58] sm:$0xff]   ;;  %v1401_v49 = vld [vmem:[#allocation7 + $0x60] sm:$0xff]   ;;  %v1403_v51 = vld [vmem:[#allocation7 + $0x68] sm:$0xff]   ;;  %p1566_p5 = scmp.lt.s32.totalorder %s2204_s17, %s1564_s6  ;;  %p1567_p9 = scmp.lt.s32.totalorder %s1565_s10, %s1559_s30 }
  0x78   : > { %414 = vmatpush1.bf16.msra.mxu0 %v1380_v8  ;;  %1233 = vmatprep.subr.bf16.mxu1 %v1395_v43  ;;  %v1400_v48 = vld [vmem:[#allocation7 + $0x18] sm:$0xff]   ;;  %v1402_v50 = vld [vmem:[#allocation7 + $0x20] sm:$0xff]   ;;  %v1404_v52 = vld [vmem:[#allocation7 + $0x28] sm:$0xff]   ;;  %p1562_p3 = pneg %p1561_p2 }
  0x79   : > { %415 = vmatprep.subr.bf16.mxu0 %v1381_v9  ;;  %v1405_v53 = vld [vmem:[#allocation7 + $0x70] sm:$0xff]   ;;  %v1407_v55 = vld [vmem:[#allocation7 + $0x78] sm:$0xff]   ;;  %v315_v60 = vld [vmem:[%s2253_s2] sm:$0x3]  ;;  %p1568_p12 = por %p1567_p9, %p1566_p5 }
  0x7a   : > { %v1406_v54 = vld [vmem:[#allocation7 + $0x30] sm:$0xff]   ;;  %v1408_v56 = vld [vmem:[#allocation7 + $0x38] sm:$0xff]   ;;  %v1893_v62 = vrot.slane %v315_v60, %v319_v59  ;;  %v1895_v63 = vrot.slane %v315_v60, %v323_v61 }
  0x7b   : > { %1234 = vmatpush3.bf16.msra.mxu1 %v1396_v44  ;;  %p1569_p1 = pnand %p1568_p12, %p1562_p3 }
  0x7c   : > { %416 = vmatpush1.bf16.msra.mxu0 %v1383_v10  ;;  %1235 = vmatprep.subr.bf16.mxu1 %v1397_v45 }
  0x7d   : > { %417 = vmatprep.subr.bf16.mxu0 %v1384_v11 }
  0x7f   : > { %1236 = vmatpush3.bf16.msra.mxu1 %v1398_v46 }
  0x80   : > { %418 = vmatpush1.bf16.msra.mxu0 %v1386_v12  ;;  %1237 = vmatprep.subr.bf16.mxu1 %v1399_v47 }
  0x81   : > { %419 = vmatprep.subr.bf16.mxu0 %v1387_v13 }
  0x83   : > { %1238 = vmatpush3.bf16.msra.mxu1 %v1400_v48 }
  0x84   : > { %420 = vmatpush1.bf16.msra.mxu0 %v1389_v14  ;;  %1239 = vmatprep.subr.bf16.mxu1 %v1401_v49 }
  0x85   : > { %421 = vmatprep.subr.bf16.mxu0 %v1390_v15 }
  0x87   : > { %1240 = vmatpush3.bf16.msra.mxu1 %v1402_v50 }
  0x88   : > { %422 = vmatpush1.bf16.msra.mxu0 %v1392_v16  ;;  %1241 = vmatprep.subr.bf16.mxu1 %v1403_v51 }
  0x8b   : > { %440 = vmatmul.mubr.bf16.vlgmr.msra.gmra.mrb[0].mxu0 %v291_v19  ;;  %1242 = vmatpush3.bf16.msra.mxu1 %v1404_v52 }
  0x8c   : > { %449 = vmatprep.mubr.bf16.mxu0 %v1638_v0  ;;  %1243 = vmatprep.subr.bf16.mxu1 %v1405_v53 }
  0x8f   : > { %1244 = vmatpush3.bf16.msra.mxu1 %v1406_v54 }
  0x90   : > { %1245 = vmatprep.subr.bf16.mxu1 %v1407_v55 }
  0x93   : > { %450 = vmatmul.mubr.bf16.gmra.mrb[4].mxu0 %v292_v22  ;;  %1246 = vmatpush3.bf16.msra.mxu1 %v1408_v56 }
  0x94   : > { %459 = vmatprep.mubr.bf16.mxu0 %v1638_v0 }
  0x9b   : > { %460 = vmatmul.mubr.bf16.gmra.mrb[8].mxu0 %v293_v25 }
  0x9c   : > { %469 = vmatprep.mubr.bf16.mxu0 %v1638_v0 }
  0xa3   : > { %470 = vmatmul.mubr.bf16.gmra.mrb[12].mxu0 %v294_v28 }
  0xa4   : > { %479 = vmatprep.mubr.bf16.mxu0 %v1638_v0 }
  0xab   : > { %480 = vmatmul.mubr.bf16.gmra.mrb[16].mxu0 %v295_v31 }
  0xac   : > { %489 = vmatprep.mubr.bf16.mxu0 %v1638_v0 }
  0xb3   : > { %490 = vmatmul.mubr.bf16.gmra.mrb[20].mxu0 %v296_v34 }
  0xb4   : > { %499 = vmatprep.mubr.bf16.mxu0 %v1638_v0 }
  0xbb   : > { %500 = vmatmul.mubr.bf16.gmra.mrb[24].mxu0 %v297_v37 }
  0xbc   : > { %509 = vmatprep.mubr.bf16.mxu0 %v1638_v0 }
  0xc3   : > { %510 = vmatmul.mubr.bf16.gmra.mrb[28].mxu0 %v298_v40 }
 0x15e   : > { %v441_v0 = vpop.f32.mrb[0].mxu0 }
 0x15f   : > { %v442_v1 = vadd.f32 %v441_v0, %v1893_v62  ;;  %v443_v2 = vpop.f32.mrb[1].mxu0 }
 0x160   : > { %v444_v3 = vadd.f32 %v443_v2, %v1895_v63  ;;  %v445_v4 = vpop.f32.mrb[2].mxu0 }
 0x161   : > { %v552_v5 = vmul.f32 %v442_v1, %v442_v1  ;;  %v446_v6 = vadd.f32 %v445_v4, %v1893_v62  ;;  %v447_v7 = vpop.f32.mrb[3].mxu0  ;;  %v1903_v20 = vmul.f32 0.5, %v442_v1 }
 0x162   : > { %v553_v8 = vmul.f32 %v444_v3, %v444_v3  ;;  %v448_v9 = vadd.f32 %v447_v7, %v1895_v63  ;;  %v1901_v19 = vmul.f32 0.5, %v444_v3 }
 0x163   : > { %v584_v10 = vmul.f32 %v552_v5, %v442_v1  ;;  %v554_v11 = vmul.f32 %v446_v6, %v446_v6  ;;  %v1906_v25 = vmul.f32 0.5, %v446_v6 }
 0x164   : > { %v585_v12 = vmul.f32 %v553_v8, %v444_v3  ;;  %v555_v13 = vmul.f32 %v448_v9, %v448_v9  ;;  %v1909_v29 = vmul.f32 0.5, %v448_v9 }
 0x165   : > { %v616_v14 = vmul.f32 0.044715, %v584_v10  ;;  %v586_v15 = vmul.f32 %v554_v11, %v446_v6 }
 0x166   : > { %v617_v16 = vmul.f32 0.044715, %v585_v12  ;;  %v587_v17 = vmul.f32 %v555_v13, %v448_v9  ;;  %v451_v18 = vpop.f32.mrb[4].mxu0 }
 0x167   : > { %v648_v21 = vadd.f32 %v616_v14, %v442_v1  ;;  %v618_v22 = vmul.f32 0.044715, %v586_v15  ;;  %v452_v23 = vadd.f32 %v451_v18, %v1893_v62  ;;  %v453_v24 = vpop.f32.mrb[5].mxu0 }
 0x168   : > { %v619_v26 = vmul.f32 0.044715, %v587_v17  ;;  %v454_v27 = vadd.f32 %v453_v24, %v1895_v63  ;;  %v455_v28 = vpop.f32.mrb[6].mxu0  ;;  %v649_v30 = vadd.f32 %v617_v16, %v444_v3 }
 0x169   : > { %v680_v31 = vmul.f32 0.7978846, %v648_v21  ;;  %v650_v32 = vadd.f32 %v618_v22, %v446_v6  ;;  %v556_v33 = vmul.f32 %v452_v23, %v452_v23  ;;  %v456_v34 = vadd.f32 %v455_v28, %v1893_v62  ;;  %v457_v35 = vpop.f32.mrb[7].mxu0 }
 0x16a   : > { %v557_v36 = vmul.f32 %v454_v27, %v454_v27  ;;  %v458_v37 = vadd.f32 %v457_v35, %v1895_v63  ;;  %v651_v38 = vadd.f32 %v619_v26, %v448_v9  ;;  %v681_v39 = vmul.f32 0.7978846, %v649_v30 }
 0x16b   : > { %1409 = vtanh.f32 %v680_v31  ;;  %v682_v40 = vmul.f32 0.7978846, %v650_v32  ;;  %v588_v41 = vmul.f32 %v556_v33, %v452_v23  ;;  %v558_v42 = vmul.f32 %v456_v34, %v456_v34 }
 0x16c   : > { %v589_v43 = vmul.f32 %v557_v36, %v454_v27  ;;  %v559_v44 = vmul.f32 %v458_v37, %v458_v37  ;;  %v683_v45 = vmul.f32 0.7978846, %v651_v38  ;;  %1411 = vtanh.f32 %v681_v39 }
 0x16d   : > { %1413 = vtanh.f32 %v682_v40  ;;  %v620_v46 = vmul.f32 0.044715, %v588_v41  ;;  %v590_v47 = vmul.f32 %v558_v42, %v456_v34  ;;  %v1913_v48 = vmul.f32 0.5, %v454_v27 }
 0x16e   : > { %v621_v49 = vmul.f32 0.044715, %v589_v43  ;;  %v591_v50 = vmul.f32 %v559_v44, %v458_v37  ;;  %v461_v51 = vpop.f32.mrb[8].mxu0  ;;  %1415 = vtanh.f32 %v683_v45  ;;  %v1915_v52 = vmul.f32 0.5, %v458_v37 }
 0x16f   : > { %v652_v53 = vadd.f32 %v620_v46, %v452_v23  ;;  %v622_v54 = vmul.f32 0.044715, %v590_v47  ;;  %v1918_v55 = vadd.f32 %v461_v51, %v1893_v62  ;;  %v463_v56 = vpop.f32.mrb[9].mxu0  ;;  %v1920_v57 = vmul.f32 0.5, %v452_v23 }
 0x170   : > { %v653_v58 = vadd.f32 %v621_v49, %v454_v27  ;;  %v623_v59 = vmul.f32 0.044715, %v591_v50  ;;  %v464_v60 = vadd.f32 %v463_v56, %v1895_v63  ;;  %v465_v61 = vpop.f32.mrb[10].mxu0  ;;  %v1923_v0 = vmul.f32 0.5, %v456_v34 }
 0x171   : > { %v684_v1 = vmul.f32 0.7978846, %v652_v53  ;;  %v654_v2 = vadd.f32 %v622_v54, %v456_v34  ;;  %v560_v3 = vmul.f32 %v1918_v55, %v1918_v55  ;;  %v1928_v4 = vadd.f32 %v465_v61, %v1893_v62  ;;  %v467_v5 = vpop.f32.mrb[11].mxu0 }
 0x172   : > { %v685_v6 = vmul.f32 0.7978846, %v653_v58  ;;  %v655_v7 = vadd.f32 %v623_v59, %v458_v37  ;;  %v561_v8 = vmul.f32 %v464_v60, %v464_v60  ;;  %v1931_v9 = vadd.f32 %v467_v5, %v1895_v63 }
 0x173   : > { %1417 = vtanh.f32 %v684_v1  ;;  %v686_v10 = vmul.f32 0.7978846, %v654_v2  ;;  %v592_v11 = vmul.f32 %v560_v3, %v1918_v55  ;;  %v562_v12 = vmul.f32 %v1928_v4, %v1928_v4 }
 0x174   : > { %1419 = vtanh.f32 %v685_v6  ;;  %v687_v13 = vmul.f32 0.7978846, %v655_v7  ;;  %v593_v14 = vmul.f32 %v561_v8, %v464_v60  ;;  %v563_v15 = vmul.f32 %v1931_v9, %v1931_v9 }
 0x175   : > { %v1410_v16 = vpop.eup %1409  ;;  %1421 = vtanh.f32 %v686_v10  ;;  %v624_v17 = vmul.f32 0.044715, %v592_v11  ;;  %v594_v18 = vmul.f32 %v562_v12, %v1928_v4  ;;  %v1939_v21 = vmul.f32 0.5, %v464_v60 }
 0x176   : > { %v1412_v22 = vpop.eup %1411  ;;  %1423 = vtanh.f32 %v687_v13  ;;  %v625_v23 = vmul.f32 0.044715, %v593_v14  ;;  %v595_v24 = vmul.f32 %v563_v15, %v1931_v9  ;;  %v471_v26 = vpop.f32.mrb[12].mxu0  ;;  %v744_v27 = vadd.f32 1.0, %v1410_v16 }
 0x177   : > { %v1414_v28 = vpop.eup %1413  ;;  %v656_v30 = vadd.f32 %v624_v17, %v1918_v55  ;;  %v626_v31 = vmul.f32 0.044715, %v594_v18  ;;  %v1944_v32 = vadd.f32 %v471_v26, %v1893_v62  ;;  %v473_v33 = vpop.f32.mrb[13].mxu0  ;;  %v745_v34 = vadd.f32 1.0, %v1412_v22 }
 0x178   : > { %v1416_v35 = vpop.eup %1415  ;;  %v657_v36 = vadd.f32 %v625_v23, %v464_v60  ;;  %v627_v37 = vmul.f32 0.044715, %v595_v24  ;;  %v1947_v38 = vadd.f32 %v473_v33, %v1895_v63  ;;  %v475_v39 = vpop.f32.mrb[14].mxu0  ;;  %v746_v40 = vadd.f32 1.0, %v1414_v28 }
 0x179   : > { %v688_v41 = vmul.f32 0.7978846, %v656_v30  ;;  %v658_v42 = vadd.f32 %v626_v31, %v1928_v4  ;;  %v564_v43 = vmul.f32 %v1944_v32, %v1944_v32  ;;  %v1953_v44 = vadd.f32 %v475_v39, %v1893_v62  ;;  %v477_v45 = vpop.f32.mrb[15].mxu0 }
 0x17a   : > { %v689_v46 = vmul.f32 0.7978846, %v657_v36  ;;  %v659_v47 = vadd.f32 %v627_v37, %v1931_v9  ;;  %v565_v49 = vmul.f32 %v1947_v38, %v1947_v38  ;;  %v1959_v50 = vadd.f32 %v477_v45, %v1895_v63 }
 0x17b   : > { %1425 = vtanh.f32 %v688_v41  ;;  %v690_v51 = vmul.f32 0.7978846, %v658_v42  ;;  %v596_v53 = vmul.f32 %v564_v43, %v1944_v32  ;;  %v566_v54 = vmul.f32 %v1953_v44, %v1953_v44 }
 0x17c   : > { %1427 = vtanh.f32 %v689_v46  ;;  %v691_v56 = vmul.f32 0.7978846, %v659_v47  ;;  %v597_v58 = vmul.f32 %v565_v49, %v1947_v38  ;;  %v567_v59 = vmul.f32 %v1959_v50, %v1959_v50 }
 0x17d   : > { %v1967_v60 = vpop.eup %1417  ;;  %1429 = vtanh.f32 %v690_v51  ;;  %v628_v61 = vmul.f32 0.044715, %v596_v53  ;;  %v598_v1 = vmul.f32 %v566_v54, %v1953_v44  ;;  %v747_v2 = vadd.f32 1.0, %v1416_v35 }
 0x17e   : > { %v1420_v3 = vpop.eup %1419  ;;  %1431 = vtanh.f32 %v691_v56  ;;  %v629_v5 = vmul.f32 0.044715, %v597_v58  ;;  %v599_v6 = vmul.f32 %v567_v59, %v1959_v50  ;;  %v481_v7 = vpop.f32.mrb[16].mxu0  ;;  %v777_v8 = vmul.f32 %v745_v34, %v1901_v19 }
 0x17f   : > { %v1972_v10 = vpop.eup %1421  ;;  %v660_v11 = vadd.f32 %v628_v61, %v1944_v32  ;;  %v630_v12 = vmul.f32 0.044715, %v598_v1  ;;  %v1976_v13 = vadd.f32 %v481_v7, %v1893_v62  ;;  %v483_v14 = vpop.f32.mrb[17].mxu0  ;;  %v779_v15 = vmul.f32 %v747_v2, %v1909_v29 }
 0x180   : > { %v1424_v16 = vpop.eup %1423  ;;  %v661_v17 = vadd.f32 %v629_v5, %v1947_v38  ;;  %v631_v18 = vmul.f32 0.044715, %v599_v6  ;;  %v1981_v22 = vadd.f32 %v483_v14, %v1895_v63  ;;  %v485_v23 = vpop.f32.mrb[18].mxu0  ;;  %v776_v19 = vmul.f32 %v744_v27, %v1903_v20 }
 0x181   : > { %v692_v24 = vmul.f32 0.7978846, %v660_v11  ;;  %v662_v26 = vadd.f32 %v630_v12, %v1953_v44  ;;  %v568_v28 = vmul.f32 %v1976_v13, %v1976_v13  ;;  %v809_v30 = vpack.c.bf16 %v779_v15, %v777_v8  ;;  %v487_v31 = vpop.f32.mrb[19].mxu0 }
 0x182   : > { %v693_v33 = vmul.f32 0.7978846, %v661_v17  ;;  %v663_v29 = vadd.f32 %v631_v18, %v1959_v50  ;;  %v569_v34 = vmul.f32 %v1981_v22, %v1981_v22  ;;  %v1991_v35 = vadd.f32 %v485_v23, %v1893_v62 }
 0x183   : > { %1433 = vtanh.f32 %v692_v24  ;;  %v694_v36 = vmul.f32 0.7978846, %v662_v26  ;;  %v600_v20 = vmul.f32 %v568_v28, %v1976_v13  ;;  %991 = vmatprep.mubr.bf16.mxu1 %v809_v30  ;;  %v778_v27 = vmul.f32 %v746_v40, %v1906_v25 }
 0x184   : > { %1435 = vtanh.f32 %v693_v33  ;;  %v695_v37 = vmul.f32 0.7978846, %v663_v29  ;;  %v601_v39 = vmul.f32 %v569_v34, %v1981_v22  ;;  %v570_v41 = vmul.f32 %v1991_v35, %v1991_v35 }
 0x185   : > { %v1998_v42 = vpop.eup %1425  ;;  %1437 = vtanh.f32 %v694_v36  ;;  %v632_v43 = vmul.f32 0.044715, %v600_v20  ;;  %v808_v45 = vpack.c.bf16 %v778_v27, %v776_v19  ;;  %v2001_v46 = vadd.f32 %v487_v31, %v1895_v63 }
 0x186   : > { %v2003_v47 = vpop.eup %1427  ;;  %1439 = vtanh.f32 %v695_v37  ;;  %v633_v49 = vmul.f32 0.044715, %v601_v39  ;;  %v602_v25 = vmul.f32 %v570_v41, %v1991_v35  ;;  %v491_v40 = vpop.f32.mrb[20].mxu0  ;;  %v749_v51 = vadd.f32 1.0, %v1420_v3 }
 0x187   : > { %v2006_v53 = vpop.eup %1429  ;;  %v664_v54 = vadd.f32 %v632_v43, %v1976_v13  ;;  %992 = vmatmul.mubr.bf16.vlgmr.msra.gmra.mrb[0].mxu1 %v808_v45  ;;  %v571_v56 = vmul.f32 %v2001_v46, %v2001_v46  ;;  %v2012_v58 = vadd.f32 %v491_v40, %v1893_v62  ;;  %v493_v59 = vpop.f32.mrb[21].mxu0  ;;  %v751_v61 = vadd.f32 1.0, %v1424_v16 }
 0x188   : > { %v2014_v1 = vpop.eup %1431  ;;  %v665_v2 = vadd.f32 %v633_v49, %v1981_v22  ;;  %v634_v5 = vmul.f32 0.044715, %v602_v25  ;;  %v2018_v3 = vadd.f32 %v493_v59, %v1895_v63  ;;  %v781_v6 = vmul.f32 %v749_v51, %v1913_v48  ;;  %v495_v7 = vpop.f32.mrb[22].mxu0 }
 0x189   : > { %v696_v8 = vmul.f32 0.7978846, %v664_v54  ;;  %v603_v11 = vmul.f32 %v571_v56, %v2001_v46  ;;  %v572_v12 = vmul.f32 %v2012_v58, %v2012_v58  ;;  %v783_v14 = vmul.f32 %v751_v61, %v1915_v52  ;;  %v497_v15 = vpop.f32.mrb[23].mxu0 }
 0x18a   : > { %v697_v16 = vmul.f32 0.7978846, %v665_v2  ;;  %v666_v17 = vadd.f32 %v634_v5, %v1991_v35  ;;  %v573_v18 = vmul.f32 %v2018_v3, %v2018_v3  ;;  %v2029_v23 = vadd.f32 %v495_v7, %v1893_v62 }
 0x18b   : > { %1441 = vtanh.f32 %v696_v8  ;;  %v635_v48 = vmul.f32 0.044715, %v603_v11  ;;  %v604_v19 = vmul.f32 %v572_v12, %v2012_v58  ;;  %v811_v24 = vpack.c.bf16 %v783_v14, %v781_v6 }
 0x18c   : > { %1443 = vtanh.f32 %v697_v16  ;;  %v698_v26 = vmul.f32 0.7978846, %v666_v17  ;;  %v605_v28 = vmul.f32 %v573_v18, %v2018_v3  ;;  %v574_v52 = vmul.f32 %v2029_v23, %v2029_v23 }
 0x18d   : > { %v2035_v30 = vpop.eup %1433  ;;  %v667_v31 = vadd.f32 %v635_v48, %v2001_v46  ;;  %v636_v33 = vmul.f32 0.044715, %v604_v19  ;;  %999 = vmatprep.mubr.bf16.mxu1 %v811_v24  ;;  %v748_v29 = vadd.f32 1.0, %v1967_v60  ;;  %v750_v34 = vadd.f32 1.0, %v1972_v10 }
 0x18e   : > { %v2040_v36 = vpop.eup %1435  ;;  %1445 = vtanh.f32 %v698_v26  ;;  %v637_v20 = vmul.f32 0.044715, %v605_v28  ;;  %v606_v27 = vmul.f32 %v574_v52, %v2029_v23  ;;  %v2044_v37 = vadd.f32 %v497_v15, %v1895_v63  ;;  %v501_v39 = vpop.f32.mrb[24].mxu0 }
 0x18f   : > { %v2046_v41 = vpop.eup %1437  ;;  %v699_v43 = vmul.f32 0.7978846, %v667_v31  ;;  %v668_v45 = vadd.f32 %v636_v33, %v2012_v58  ;;  %v780_v49 = vmul.f32 %v748_v29, %v1920_v57  ;;  %v782_v60 = vmul.f32 %v750_v34, %v1923_v0  ;;  %v503_v10 = vpop.f32.mrb[25].mxu0 }
 0x190   : > { %v2051_v25 = vpop.eup %1439  ;;  %v669_v40 = vadd.f32 %v637_v20, %v2018_v3  ;;  %v638_v51 = vmul.f32 0.044715, %v606_v27  ;;  %v575_v54 = vmul.f32 %v2044_v37, %v2044_v37  ;;  %v2057_v56 = vadd.f32 %v501_v39, %v1893_v62  ;;  %v505_v59 = vpop.f32.mrb[26].mxu0 }
 0x191   : > { %1447 = vtanh.f32 %v699_v43  ;;  %v700_v61 = vmul.f32 0.7978846, %v668_v45  ;;  %v810_v2 = vpack.c.bf16 %v782_v60, %v780_v49  ;;  %v2060_v57 = vadd.f32 %v503_v10, %v1895_v63  ;;  %v507_v0 = vpop.f32.mrb[27].mxu0 }
 0x192   : > { %v701_v5 = vmul.f32 0.7978846, %v669_v40  ;;  %v670_v6 = vadd.f32 %v638_v51, %v2029_v23  ;;  %v607_v7 = vmul.f32 %v575_v54, %v2044_v37  ;;  %v576_v8 = vmul.f32 %v2057_v56, %v2057_v56 }
 0x193   : > { %1449 = vtanh.f32 %v700_v61  ;;  %1000 = vmatmul.mubr.bf16.gmra.mrb[4].mxu1 %v810_v2  ;;  %v577_v11 = vmul.f32 %v2060_v57, %v2060_v57  ;;  %v531_v12 = vmul.f32 0.5, %v1931_v9  ;;  %v753_v14 = vadd.f32 1.0, %v2003_v47 }
 0x194   : > { %1451 = vtanh.f32 %v701_v5  ;;  %v702_v15 = vmul.f32 0.7978846, %v670_v6  ;;  %v639_v16 = vmul.f32 0.044715, %v607_v7  ;;  %v608_v17 = vmul.f32 %v576_v8, %v2057_v56 }
 0x195   : > { %v2071_v18 = vpop.eup %1441  ;;  %v609_v48 = vmul.f32 %v577_v11, %v2060_v57  ;;  %v755_v19 = vadd.f32 1.0, %v2014_v1  ;;  %v785_v24 = vmul.f32 %v753_v14, %v1939_v21  ;;  %v2077_v26 = vadd.f32 %v505_v59, %v1893_v62 }
 0x196   : > { %v2079_v28 = vpop.eup %1443  ;;  %1453 = vtanh.f32 %v702_v15  ;;  %v671_v9 = vadd.f32 %v639_v16, %v2044_v37  ;;  %v640_v47 = vmul.f32 0.044715, %v608_v17  ;;  %v528_v52 = vmul.f32 0.5, %v1918_v55  ;;  %v511_v31 = vpop.f32.mrb[28].mxu0 }
 0x197   : > { %v641_v33 = vmul.f32 0.044715, %v609_v48  ;;  %v787_v29 = vmul.f32 %v755_v19, %v531_v12  ;;  %v578_v34 = vmul.f32 %v2077_v26, %v2077_v26  ;;  %v530_v1 = vmul.f32 0.5, %v1928_v4  ;;  %v513_v21 = vpop.f32.mrb[29].mxu0 }
 0x198   : > { %v2086_v20 = vpop.eup %1445  ;;  %v703_v27 = vmul.f32 0.7978846, %v671_v9  ;;  %v672_v39 = vadd.f32 %v640_v47, %v2057_v56  ;;  %v752_v43 = vadd.f32 1.0, %v1998_v42  ;;  %v754_v45 = vadd.f32 1.0, %v2006_v53  ;;  %v515_v49 = vpop.f32.mrb[30].mxu0 }
 0x199   : > { %v673_v55 = vadd.f32 %v641_v33, %v2060_v57  ;;  %v813_v60 = vpack.c.bf16 %v787_v29, %v785_v24  ;;  %v610_v10 = vmul.f32 %v578_v34, %v2077_v26  ;;  %v2094_v40 = vadd.f32 %v507_v0, %v1895_v63  ;;  %v517_v4 = vpop.f32.mrb[31].mxu0 }
 0x19a   : > { %1455 = vtanh.f32 %v703_v27  ;;  %v704_v51 = vmul.f32 0.7978846, %v672_v39  ;;  %v784_v54 = vmul.f32 %v752_v43, %v528_v52  ;;  %v786_v59 = vmul.f32 %v754_v45, %v530_v1 }
 0x19b   : > { %v1448_v61 = vpop.eup %1447  ;;  %v705_v2 = vmul.f32 0.7978846, %v673_v55  ;;  %1007 = vmatprep.mubr.bf16.mxu1 %v813_v60  ;;  %v642_v42 = vmul.f32 0.044715, %v610_v10  ;;  %v579_v53 = vmul.f32 %v2094_v40, %v2094_v40  ;;  %v2099_v5 = vadd.f32 %v511_v31, %v1893_v62 }
 0x19c   : > { %1457 = vtanh.f32 %v704_v51  ;;  %v812_v6 = vpack.c.bf16 %v786_v59, %v784_v54  ;;  %v2102_v0 = vadd.f32 %v513_v21, %v1895_v63  ;;  %v533_v7 = vmul.f32 0.5, %v1947_v38 }
 0x19d   : > { %v2105_v8 = vpop.eup %1449  ;;  %1459 = vtanh.f32 %v705_v2  ;;  %v674_v11 = vadd.f32 %v642_v42, %v2077_v26  ;;  %v611_v12 = vmul.f32 %v579_v53, %v2094_v40  ;;  %v580_v14 = vmul.f32 %v2099_v5, %v2099_v5 }
 0x19e   : > { %v1452_v15 = vpop.eup %1451  ;;  %1008 = vmatmul.mubr.bf16.gmra.mrb[8].mxu1 %v812_v6  ;;  %v581_v16 = vmul.f32 %v2102_v0, %v2102_v0  ;;  %v535_v17 = vmul.f32 0.5, %v1959_v50  ;;  %v757_v48 = vadd.f32 1.0, %v2040_v36  ;;  %v759_v38 = vadd.f32 1.0, %v2051_v25 }
 0x19f   : > { %v706_v19 = vmul.f32 0.7978846, %v674_v11  ;;  %v643_v24 = vmul.f32 0.044715, %v611_v12  ;;  %v612_v9 = vmul.f32 %v580_v14, %v2099_v5  ;;  %v2118_v47 = vadd.f32 %v515_v49, %v1893_v62 }
 0x1a0   : > { %v1454_v52 = vpop.eup %1453  ;;  %v613_v31 = vmul.f32 %v581_v16, %v2102_v0  ;;  %v789_v33 = vmul.f32 %v757_v48, %v533_v7  ;;  %v791_v29 = vmul.f32 %v759_v38, %v535_v17  ;;  %v532_v34 = vmul.f32 0.5, %v1944_v32 }
 0x1a1   : > { %1461 = vtanh.f32 %v706_v19  ;;  %v675_v50 = vadd.f32 %v643_v24, %v2094_v40  ;;  %v644_v36 = vmul.f32 0.044715, %v612_v9  ;;  %v582_v25 = vmul.f32 %v2118_v47, %v2118_v47 }
 0x1a2   : > { %v645_v1 = vmul.f32 0.044715, %v613_v31  ;;  %v815_v21 = vpack.c.bf16 %v791_v29, %v789_v33  ;;  %v534_v27 = vmul.f32 0.5, %v1953_v44  ;;  %v756_v62 = vadd.f32 1.0, %v2035_v30 }
 0x1a3   : > { %v707_v39 = vmul.f32 0.7978846, %v675_v50  ;;  %v676_v43 = vadd.f32 %v644_v36, %v2099_v5  ;;  %v614_v45 = vmul.f32 %v582_v25, %v2118_v47  ;;  %v758_v32 = vadd.f32 1.0, %v2046_v41 }
 0x1a4   : > { %v1456_v49 = vpop.eup %1455  ;;  %v677_v55 = vadd.f32 %v645_v1, %v2102_v0  ;;  %1015 = vmatprep.mubr.bf16.mxu1 %v815_v21  ;;  %v788_v60 = vmul.f32 %v756_v62, %v532_v34  ;;  %v2132_v10 = vadd.f32 %v517_v4, %v1895_v63  ;;  %v537_v51 = vmul.f32 0.5, %v1981_v22 }
 0x1a5   : > { %1463 = vtanh.f32 %v707_v39  ;;  %v708_v44 = vmul.f32 0.7978846, %v676_v43  ;;  %v646_v30 = vmul.f32 0.044715, %v614_v45  ;;  %v790_v54 = vmul.f32 %v758_v32, %v534_v27 }
 0x1a6   : > { %v1458_v59 = vpop.eup %1457  ;;  %v709_v2 = vmul.f32 0.7978846, %v677_v55  ;;  %v583_v42 = vmul.f32 %v2132_v10, %v2132_v10  ;;  %v539_v41 = vmul.f32 0.5, %v2001_v46  ;;  %v761_v53 = vadd.f32 1.0, %v2079_v28 }
 0x1a7   : > { %v1460_v6 = vpop.eup %1459  ;;  %1465 = vtanh.f32 %v708_v44  ;;  %v678_v63 = vadd.f32 %v646_v30, %v2118_v47  ;;  %v814_v4 = vpack.c.bf16 %v790_v54, %v788_v60  ;;  %v763_v7 = vadd.f32 1.0, %v1448_v61 }
 0x1a8   : > { %1467 = vtanh.f32 %v709_v2  ;;  %v615_v22 = vmul.f32 %v583_v42, %v2132_v10  ;;  %v793_v11 = vmul.f32 %v761_v53, %v537_v51  ;;  %v536_v16 = vmul.f32 0.5, %v1976_v13 }
 0x1a9   : > { %v710_v12 = vmul.f32 0.7978846, %v678_v63  ;;  %1016 = vmatmul.mubr.bf16.gmra.mrb[12].mxu1 %v814_v4  ;;  %v795_v14 = vmul.f32 %v763_v7, %v539_v41  ;;  %v760_v17 = vadd.f32 1.0, %v2071_v18  ;;  %v538_v28 = vmul.f32 0.5, %v1991_v35 }
 0x1aa   : > { %v647_v46 = vmul.f32 0.044715, %v615_v22  ;;  %v762_v48 = vadd.f32 1.0, %v2086_v20  ;;  %v541_v38 = vmul.f32 0.5, %v2018_v3  ;;  %v543_v24 = vmul.f32 0.5, %v2044_v37 }
 0x1ab   : > { %v1462_v19 = vpop.eup %1461  ;;  %1469 = vtanh.f32 %v710_v12  ;;  %v817_v61 = vpack.c.bf16 %v795_v14, %v793_v11  ;;  %v765_v9 = vadd.f32 1.0, %v1452_v15  ;;  %v792_v33 = vmul.f32 %v760_v17, %v536_v16 }
 0x1ac   : > { %v679_v31 = vadd.f32 %v647_v46, %v2132_v10  ;;  %v794_v29 = vmul.f32 %v762_v48, %v538_v28  ;;  %v767_v13 = vadd.f32 1.0, %v1456_v49  ;;  %v540_v18 = vmul.f32 0.5, %v2012_v58 }
 0x1ad   : > { %1023 = vmatprep.mubr.bf16.mxu1 %v817_v61  ;;  %v542_v35 = vmul.f32 0.5, %v2029_v23  ;;  %v764_v20 = vadd.f32 1.0, %v2105_v8  ;;  %v766_v34 = vadd.f32 1.0, %v1454_v52  ;;  %v797_v36 = vmul.f32 %v765_v9, %v541_v38 }
 0x1ae   : > { %v711_v3 = vmul.f32 0.7978846, %v679_v31  ;;  %v816_v50 = vpack.c.bf16 %v794_v29, %v792_v33  ;;  %v799_v25 = vmul.f32 %v767_v13, %v543_v24  ;;  %v545_v21 = vmul.f32 0.5, %v2060_v57 }
 0x1af   : > { %v1464_v1 = vpop.eup %1463  ;;  %v796_v37 = vmul.f32 %v764_v20, %v540_v18  ;;  %v798_v15 = vmul.f32 %v766_v34, %v542_v35  ;;  %v769_v27 = vadd.f32 1.0, %v1460_v6  ;;  %v547_v39 = vmul.f32 0.5, %v2094_v40 }
 0x1b0   : > { %1471 = vtanh.f32 %v711_v3  ;;  %v819_v62 = vpack.c.bf16 %v799_v25, %v797_v36  ;;  %v771_v58 = vadd.f32 1.0, %v1464_v1  ;;  %v544_v8 = vmul.f32 0.5, %v2057_v56 }
 0x1b1   : > { %v1466_v43 = vpop.eup %1465  ;;  %1024 = vmatmul.mubr.bf16.gmra.mrb[16].mxu1 %v816_v50  ;;  %v818_v23 = vpack.c.bf16 %v798_v15, %v796_v37  ;;  %v768_v52 = vadd.f32 1.0, %v1458_v59  ;;  %v801_v32 = vmul.f32 %v769_v27, %v545_v21  ;;  %v546_v55 = vmul.f32 0.5, %v2077_v26 }
 0x1b2   : > { %v1468_v45 = vpop.eup %1467  ;;  %1031 = vmatprep.mubr.bf16.mxu1 %v819_v62  ;;  %v803_v49 = vmul.f32 %v771_v58, %v547_v39  ;;  %v770_v60 = vadd.f32 1.0, %v1462_v19  ;;  %v772_v30 = vadd.f32 1.0, %v1466_v43  ;;  %v548_v2 = vmul.f32 0.5, %v2099_v5 }
 0x1b3   : > { %v800_v51 = vmul.f32 %v768_v52, %v544_v8  ;;  %v550_v42 = vmul.f32 0.5, %v2118_v47  ;;  %v773_v53 = vadd.f32 1.0, %v1468_v45  ;;  %v549_v26 = vmul.f32 0.5, %v2102_v0  ;;  %v2162_v47 = vld [vmem:[%s2255_s4] ss:$0 sm:$0xff] }
 0x1b4   : > { %v821_v57 = vpack.c.bf16 %v803_v49, %v801_v32  ;;  %v802_v44 = vmul.f32 %v770_v60, %v546_v55  ;;  %v804_v56 = vmul.f32 %v772_v30, %v548_v2  ;;  %v551_v4 = vmul.f32 0.5, %v2132_v10 }
 0x1b5   : > { %v1470_v54 = vpop.eup %1469  ;;  %v805_v22 = vmul.f32 %v773_v53, %v549_v26 }
 0x1b6   : > { %v820_v40 = vpack.c.bf16 %v802_v44, %v800_v51  ;;  %v774_v41 = vadd.f32 1.0, %v1470_v54 }
 0x1b8   : > { %v806_v59 = vmul.f32 %v774_v41, %v550_v42 }
 0x1b9   : > { %1032 = vmatmul.mubr.bf16.gmra.mrb[20].mxu1 %v818_v23 }
 0x1ba   : > { %v1472_v6 = vpop.eup %1471  ;;  %1039 = vmatprep.mubr.bf16.mxu1 %v821_v57  ;;  %v822_v63 = vpack.c.bf16 %v806_v59, %v804_v56 }
 0x1bb   : > { %v775_v7 = vadd.f32 1.0, %v1472_v6 }
 0x1bd   : > { %v807_v11 = vmul.f32 %v775_v7, %v551_v4 }
 0x1bf   : > { %v823_v12 = vpack.c.bf16 %v807_v11, %v805_v22 }
 0x1c1   : > { %1040 = vmatmul.mubr.bf16.gmra.mrb[24].mxu1 %v820_v40 }
 0x1c2   : > { %1047 = vmatprep.mubr.bf16.mxu1 %v823_v12 }
 0x1c9   : > { %1048 = vmatmul.mubr.bf16.gmra.mrb[28].mxu1 %v822_v63 }
 0x25a   : > { %v1247_v5 = vpop.f32.mrb[0].mxu1 }
 0x25b   : > { %v1248_v14 = vpop.f32.mrb[1].mxu1 }
 0x25c   : > { %v1249_v16 = vadd.f32 %v1248_v14, %v1247_v5  ;;  %v1250_v17 = vpop.f32.mrb[2].mxu1 }
 0x25d   : > { %v1251_v0 = vpop.f32.mrb[3].mxu1 }
 0x25e   : > { %v994_v10 = vadd.f32 %v1249_v16, %v2162_v47  ;;  %v1252_v46 = vadd.f32 %v1251_v0, %v1250_v17 }
 0x260   : > { %1056 = vst [vmem:[%s2167_s28] sm:$0xff] %v994_v10  ;;  %v997_v28 = vadd.f32 %v1252_v46, %v2162_v47 }
 0x262   : > { %1057 = vst [vmem:[%s2167_s28 + $0x8] sm:$0xff] %v997_v28 }
 0x266   : > { %v1253_v48 = vpop.f32.mrb[4].mxu1 }
 0x267   : > { %v1254_v38 = vpop.f32.mrb[5].mxu1 }
 0x268   : > { %v1255_v19 = vadd.f32 %v1254_v38, %v1253_v48  ;;  %v1256_v61 = vpop.f32.mrb[6].mxu1 }
 0x269   : > { %v1257_v24 = vpop.f32.mrb[7].mxu1 }
 0x26a   : > { %v1002_v9 = vadd.f32 %v1255_v19, %v2162_v47  ;;  %v1258_v31 = vadd.f32 %v1257_v24, %v1256_v61 }
 0x26c   : > { %1058 = vst [vmem:[%s2167_s28 + $0x10] sm:$0xff] %v1002_v9  ;;  %v1005_v33 = vadd.f32 %v1258_v31, %v2162_v47 }
 0x26e   : > { %1059 = vst [vmem:[%s2167_s28 + $0x18] sm:$0xff] %v1005_v33 }
 0x271   : > { %v1259_v29 = vpop.f32.mrb[8].mxu1 }
 0x272   : > { %v1260_v13 = vpop.f32.mrb[9].mxu1 }
 0x273   : > { %v1261_v18 = vadd.f32 %v1260_v13, %v1259_v29  ;;  %v1262_v35 = vpop.f32.mrb[10].mxu1 }
 0x274   : > { %v1263_v20 = vpop.f32.mrb[11].mxu1 }
 0x275   : > { %v1010_v34 = vadd.f32 %v1261_v18, %v2162_v47  ;;  %v1264_v3 = vadd.f32 %v1263_v20, %v1262_v35 }
 0x277   : > { %1060 = vst [vmem:[%s2167_s28 + $0x20] sm:$0xff] %v1010_v34  ;;  %v1013_v50 = vadd.f32 %v1264_v3, %v2162_v47 }
 0x279   : > { %1061 = vst [vmem:[%s2167_s28 + $0x28] sm:$0xff] %v1013_v50 }
 0x27c   : > { %v1265_v36 = vpop.f32.mrb[12].mxu1 }
 0x27d   : > { %v1266_v25 = vpop.f32.mrb[13].mxu1 }
 0x27e   : > { %v1267_v1 = vadd.f32 %v1266_v25, %v1265_v36  ;;  %v1268_v37 = vpop.f32.mrb[14].mxu1 }
 0x27f   : > { %v1269_v15 = vpop.f32.mrb[15].mxu1 }
 0x280   : > { %v1018_v21 = vadd.f32 %v1267_v1, %v2162_v47  ;;  %v1270_v27 = vadd.f32 %v1269_v15, %v1268_v37 }
 0x282   : > { %1062 = vst [vmem:[%s2167_s28 + $0x30] sm:$0xff] %v1018_v21  ;;  %v1021_v62 = vadd.f32 %v1270_v27, %v2162_v47 }
 0x284   : > { %1063 = vst [vmem:[%s2167_s28 + $0x38] sm:$0xff] %v1021_v62  ;;  %v1271_v39 = vpop.f32.mrb[16].mxu1 }
 0x285   : > { %v1272_v58 = vpop.f32.mrb[17].mxu1 }
 0x286   : > { %v1273_v43 = vadd.f32 %v1272_v58, %v1271_v39  ;;  %v1274_v23 = vpop.f32.mrb[18].mxu1 }
 0x287   : > { %v1275_v8 = vpop.f32.mrb[19].mxu1 }
 0x288   : > { %v1026_v52 = vadd.f32 %v1273_v43, %v2162_v47  ;;  %v1276_v45 = vadd.f32 %v1275_v8, %v1274_v23 }
 0x28a   : > { %1064 = vst [vmem:[%s2167_s28 + $0x40] sm:$0xff] %v1026_v52  ;;  %v1029_v32 = vadd.f32 %v1276_v45, %v2162_v47 }
 0x28c   : > { %1065 = vst [vmem:[%s2167_s28 + $0x48] sm:$0xff] %v1029_v32  ;;  %v1277_v49 = vpop.f32.mrb[20].mxu1 }
 0x28d   : > { %v1278_v55 = vpop.f32.mrb[21].mxu1 }
 0x28e   : > { %v1279_v60 = vadd.f32 %v1278_v55, %v1277_v49  ;;  %v1280_v57 = vpop.f32.mrb[22].mxu1 }
 0x28f   : > { %v1281_v51 = vpop.f32.mrb[23].mxu1 }
 0x290   : > { %v1034_v44 = vadd.f32 %v1279_v60, %v2162_v47  ;;  %v1282_v30 = vadd.f32 %v1281_v51, %v1280_v57 }
 0x292   : > { %1066 = vst [vmem:[%s2167_s28 + $0x50] sm:$0xff] %v1034_v44  ;;  %v1037_v54 = vadd.f32 %v1282_v30, %v2162_v47 }
 0x294   : > { %1067 = vst [vmem:[%s2167_s28 + $0x58] sm:$0xff] %v1037_v54  ;;  %v1283_v40 = vpop.f32.mrb[24].mxu1 }
 0x295   : > { %v1284_v2 = vpop.f32.mrb[25].mxu1 }
 0x296   : > { %v1285_v42 = vadd.f32 %v1284_v2, %v1283_v40  ;;  %v1286_v41 = vpop.f32.mrb[26].mxu1 }
 0x297   : > { %v1287_v56 = vpop.f32.mrb[27].mxu1 }
 0x298   : > { %v1042_v59 = vadd.f32 %v1285_v42, %v2162_v47  ;;  %v1288_v53 = vadd.f32 %v1287_v56, %v1286_v41 }
 0x29a   : > { %1068 = vst [vmem:[%s2167_s28 + $0x60] sm:$0xff] %v1042_v59  ;;  %v1045_v6 = vadd.f32 %v1288_v53, %v2162_v47 }
 0x29c   : > { %1069 = vst [vmem:[%s2167_s28 + $0x68] sm:$0xff] %v1045_v6  ;;  %v1289_v63 = vpop.f32.mrb[28].mxu1 }
 0x29d   : > { %v1290_v26 = vpop.f32.mrb[29].mxu1 }
 0x29e   : > { %v1291_v4 = vadd.f32 %v1290_v26, %v1289_v63  ;;  %v1292_v7 = vpop.f32.mrb[30].mxu1 }
 0x29f   : > { %v1293_v22 = vpop.f32.mrb[31].mxu1 }
 0x2a0   : > { %v1050_v11 = vadd.f32 %v1291_v4, %v2162_v47  ;;  %v1294_v12 = vadd.f32 %v1293_v22, %v1292_v7 }
 0x2a2   : > { %1070 = vst [vmem:[%s2167_s28 + $0x70] sm:$0xff] %v1050_v11  ;;  %v1053_v5 = vadd.f32 %v1294_v12, %v2162_v47 }
 0x2a4   : > { %1071 = vst [vmem:[%s2167_s28 + $0x78] sm:$0xff] %v1053_v5 }
 0x2a5   : > { %1572 = shalt.err (!%p1569_p1)
}
 0x2a6   : > { %s1573_s14 = scalar_lea.hbm %s2202_s12, 2048  ;;  %s1577_s15 = scalar_lea.hbm %s2256_s5, 4096 }
 0x2a7   : > { %p1574_p13 = scmp.ne.s32.totalorder %s2202_s12, %s1573_s14  ;;  %p1578_p4 = scmp.lt.u32.totalorder %s2202_s12, %s2256_s5 }
 0x2a8   : > { %p1579_p7 = scmp.lt.u32.totalorder %s1577_s15, %s1573_s14  ;;  %p1581_p11 = scmp.lt.u32.totalorder %s1573_s14, %s2202_s12 }
 0x2a9   : > { %p1575_p6 = pnand %p1574_p13, %p2270_p0 }
 0x2aa   : > { %p1580_p8 = por %p1579_p7, %p1578_p4 }
 0x2ab   : > { %p1576_p10 = pneg %p1575_p6 }
 0x2ac   : > { %p1582_p2 = por %p1581_p11, %p1580_p8 }
 0x2ae   : > { %p1583_p3 = pnand %p1582_p2, %p1576_p10 }
 0x2b0   : > { %1586 = shalt.err (!%p1583_p3)
}
 0x2b1   : > { %s1640_s13 = smov 128   ;;  %s1641_s11 = smov 8  }
 0x2b2   : > { %1305 = dma.vmem_to_hbm [thread:$0]  (%p2270_p0), %s2204_s17, 2048, %s2202_s12, %s1073_s22, %s1640_s13, %s1640_s13, %s1641_s11  }
 0x2b3 PF: > { %s1101_s29 = sand.u32 1, %s1617_s18   ;;  %p2271_p5 = scmp.ne.s32.totalorder %s2261_s25, 0 }
 0x2b4   : > { %p2272_p9 = scmp.ge.s32.totalorder %s1629_s21, 2  ;;  %s1102_s30 = scalar_lea.sflag [#allocation4], %s1101_s29 }
 0x2b6   : > { %p1319_p12 = pnand %p2272_p9, %p2271_p5 }
 0x2b8   : > { %1612 = dma.done.wait (!%p1319_p12), %s1102_s30, 2048  }
 0x2b9   : > { %1614 = vsyncadd (!%p1319_p12), %s1102_s30, 4294965248  ;;  %p19_p1 = scmp.ge.s32.totalorder %s1785_s23, 4   ;;  %s2273_s18 = smov %s1621_s19 }
 0x2ba   : > { %s2274_s19 = smov %s1625_s20  ;;  %s2275_s20 = smov %s1794_s7 }
 0x2bb   : > { %s2276_s21 = smov %s1785_s23  ;;  %21 = sbr.rel (!%p19_p1) target bundleno = 6 (0x6), region = 93 }
 0x2c2   :  { %1107 = vsyncpa [#allocation3], 1 }
 0x2c3   :  { %1109 = vsyncpa [#allocation3 + $0x1], 1 }
 0x2c4   :  { %1110 = vsyncpa [#allocation6], 1 }
 0x2c5   :  { %1111 = vsyncpa [#allocation4], 1 }
 0x2c6   :  { %1113 = vsyncpa [#allocation4 + $0x1], 1 }

</bundles_post_ra>
